<compile_context>
chip_gen: v6e
topology: v6e:2x2x1
jax: 0.10.0
libtpu: 0.0.40
codegen_flags: <defaults>
</compile_context>

<pallas_src>
import numpy as np
import jax
import jax.numpy as jnp
from jax.experimental import pallas as pl
from jax.experimental.pallas import tpu as pltpu


# --------------------------- fused bottleneck kernel ---------------------------

def _bottleneck_kernel(x_ref, w_ref, b_ref, r_ref, o_ref):
    """out = ReLU(x @ w + residual + bias).  o_ref doubles as the fp32 K-accumulator."""
    k = pl.program_id(1)

    @pl.when(k == 0)
    def _init():
        # Bias + pyramid residual folded into accumulator init (once per M tile).
        o_ref[...] = r_ref[...].astype(jnp.float32) + b_ref[...]

    o_ref[...] += jnp.dot(x_ref[...], w_ref[...],
                          preferred_element_type=jnp.float32)

    @pl.when(k == pl.num_programs(1) - 1)
    def _finalize():
        o_ref[...] = jnp.maximum(o_ref[...], 0.0)


def _round_up(x, m):
    return ((x + m - 1) // m) * m


def _vmem_capacity_bytes():
    """Physical VMEM per TensorCore; conservative default if query unavailable."""
    try:
        cap = getattr(pltpu.get_tpu_info(), "vmem_capacity_bytes", None)
        if cap:
            return int(cap)
    except Exception:
        pass
    return 64 << 20   # v7x per-TC VMEM (smallest of the targeted generations)


def _pick_tm(M, tm_target):
    """Largest tile <= tm_target dividing M (multiple of 8); prefer >= 2 tiles."""
    if M <= tm_target:
        if M % 16 == 0 and M // 2 >= 128:
            return M // 2          # >= 2 parallel M tiles -> both v7x TCs get work
        return M
    cap = tm_target - tm_target % 8
    for cand in range(cap, 7, -8):
        if M % cand == 0:
            return cand
    return tm_target               # no clean divisor -> caller pads M (rare)


def _pick_tk(K, F, vmem_cap):
    """Full-K (VMEM-resident weight) whenever the bf16 weight fits comfortably."""
    if 2 * K * F * 2 <= int(0.3 * vmem_cap):   # double-buffer-counted, ~19 MiB on 64 MiB parts
        return K
    for cand in range(2048, 127, -128):
        if K % cand == 0:
            return cand
    return 2048                    # no clean divisor -> caller pads K (cold path)


def fused_bottleneck_conv_relu(x, w, b, residual):
    """ReLU(x @ w + residual + b).

    x:        (M, K)  bf16  flattened pixels x channels
    w:        (K, F)  bf16  pre-transposed bottleneck weight block for x
    b:        (1, F)  fp32  bias
    residual: (M, F)  bf16  pre-accumulated pyramid contribution
    returns   (M, F)  fp32
    """
    M, K = x.shape
    F = w.shape[1]

    vmem_cap = _vmem_capacity_bytes()
    tm_target = 1024 if vmem_cap >= (100 << 20) else 512   # v5e/v6e: 128 MiB, v7x: 64 MiB
    tm = _pick_tm(M, tm_target)
    tk = _pick_tk(K, F, vmem_cap)

    Mp = _round_up(M, tm)
    Kp = _round_up(K, tk)
    if Mp != M:
        # TODO(synk): rare path; in-kernel ragged-M masking would avoid this HBM copy.
        x = jnp.pad(x, ((0, Mp - M), (0, 0)))
        residual = jnp.pad(residual, ((0, Mp - M), (0, 0)))
    if Kp != K:
        x = jnp.pad(x, ((0, 0), (0, Kp - K)))
        w = jnp.pad(w, ((0, Kp - K), (0, 0)))

    grid = (Mp // tm, Kp // tk)            # K (reduction) axis last
    resident_w = grid[1] == 1

    if resident_w:
        # Constant block index -> weight DMA'd once and kept resident in VMEM.
        w_spec = pl.BlockSpec((tk, F), lambda i, k: (0, 0))
        w_bufs = 2
    else:
        # Cold fallback for very large K: deeper buffering hides the re-streamed w DMA.
        w_spec = pl.BlockSpec((tk, F), lambda i, k: (k, 0),
                              pipeline_mode=pl.Buffered(3))
        w_bufs = 3

    # VMEM budget: double-buffered x / residual / out blocks + weight buffers + slack.
    need = (2 * tm * tk * 2) + (2 * tm * F * 2) + (2 * tm * F * 4) \
        + (w_bufs * tk * F * 2) + (2 << 20)
    vmem_limit = int(min(max(int(need * 1.25), 32 << 20), int(vmem_cap * 0.9)))

    out = pl.pallas_call(
        _bottleneck_kernel,
        out_shape=jax.ShapeDtypeStruct((Mp, F), jnp.float32),
        grid=grid,
        in_specs=[
            pl.BlockSpec((tm, tk), lambda i, k: (i, k)),   # x tile (bf16)
            w_spec,                                        # weight (bf16, resident)
            pl.BlockSpec((1, F), lambda i, k: (0, 0)),     # bias (fp32, invariant)
            pl.BlockSpec((tm, F), lambda i, k: (i, 0)),    # residual tile (bf16, per-M)
        ],
        out_specs=pl.BlockSpec((tm, F), lambda i, k: (i, 0)),   # fp32 accumulator/output
        compiler_params=pltpu.CompilerParams(
            dimension_semantics=("parallel", "arbitrary"),
            vmem_limit_bytes=vmem_limit),
    )(x, w, b, residual)

    return out[:M] if Mp != M else out


# ---------------------- exact pool / upsample matrices ---------------------

def _adaptive_pool_matrix(in_size, out_size):
    # Matches torch.nn.AdaptiveAvgPool2d bin boundaries exactly.
    m = np.zeros((out_size, in_size), dtype=np.float32)
    for i in range(out_size):
        start = (i * in_size) // out_size
        end = -(-((i + 1) * in_size) // out_size)  # ceil div
        m[i, start:end] = 1.0 / (end - start)
    return jnp.asarray(m)


def _bilinear_upsample_matrix(in_size, out_size):
    # F.interpolate(mode='bilinear', align_corners=True), separable 1-D weights.
    m = np.zeros((out_size, in_size), dtype=np.float32)
    for h in range(out_size):
        if in_size == 1 or out_size == 1:
            src = 0.0
        else:
            src = h * (in_size - 1) / (out_size - 1)
        i0 = min(int(np.floor(src)), in_size - 1)
        frac = src - i0
        m[h, i0] += 1.0 - frac
        if frac > 0.0:
            m[h, min(i0 + 1, in_size - 1)] += frac
    return jnp.asarray(m)


# ------------------------------ PSP module --------------------------------

def init_psp_params(key, features, out_features=1024, sizes=(1, 2, 3, 6)):
    """Raw parameters in the PyTorch layout (for reference / reproducibility)."""
    keys = jax.random.split(key, len(sizes) + 2)
    stage_w = [
        0.1 * jax.random.normal(keys[i], (features, features), jnp.float32)
        for i in range(len(sizes))
    ]  # Conv2d(features, features, 1, bias=False): weight (out_c, in_c)
    bottleneck_w = 0.1 * jax.random.normal(
        keys[-2], (out_features, features * (len(sizes) + 1)), jnp.float32
    )  # Conv2d(features*(len+1), out_features, 1): weight (out_c, in_c)
    bottleneck_b = 0.1 * jax.random.normal(keys[-1], (out_features,), jnp.float32)
    return dict(sizes=tuple(sizes), stage_w=stage_w, bw=bottleneck_w, bb=bottleneck_b)


def prepare_psp_params(raw):
    """One-time algebraic fold + pre-transpose (done at init time, not per forward)."""
    sizes = raw["sizes"]
    C = raw["stage_w"][0].shape[0]
    bw = raw["bw"]                       # (out_features, C*(len(sizes)+1))
    n = len(sizes)
    folded = []
    for i, Wi in enumerate(raw["stage_w"]):
        bw_i = bw[:, i * C:(i + 1) * C]                      # (out, C)
        folded.append((Wi.T @ bw_i.T).astype(jnp.float32))   # (C, out)
    w_x = bw[:, n * C:(n + 1) * C].T                         # (C, out) pre-transposed
    return dict(
        sizes=sizes,
        folded=folded,
        w_x=w_x.astype(jnp.bfloat16),    # bf16 MXU operand (fp32 accumulation in-kernel)
        bias=raw["bb"].reshape(1, -1).astype(jnp.float32),
    )


def psp_forward(params, x_nchw):
    N, C, H, W = x_nchw.shape
    F = params["w_x"].shape[1]

    # Cast to bf16 BEFORE the big layout transpose so it moves 2-byte elements.
    x = jnp.transpose(x_nchw.astype(jnp.bfloat16), (0, 2, 3, 1))   # NCHW -> NHWC (bf16)

    # Pyramid residual: pooled_i @ folded_i at (s,s) resolution, upsampled, summed.
    # Tiny (<= N*36 rows) matmuls -> left to XLA.  Accumulate fp32, store bf16.
    residual = jnp.zeros((N, H, W, F), jnp.float32)
    for s, folded in zip(params["sizes"], params["folded"]):
        Ah = _adaptive_pool_matrix(H, s)                 # (s, H)
        Aw = _adaptive_pool_matrix(W, s)                 # (s, W)
        pooled = jnp.einsum("ph,nhwc->npwc", Ah, x)          # promotes to fp32
        pooled = jnp.einsum("qw,npwc->npqc", Aw, pooled)     # (N, s, s, C)
        st = jnp.einsum("npqc,cf->npqf", pooled, folded)     # (N, s, s, F)  tiny
        Uh = _bilinear_upsample_matrix(s, H)             # (H, s)
        Uw = _bilinear_upsample_matrix(s, W)             # (W, s)
        up = jnp.einsum("hp,npqf->nhqf", Uh, st)
        up = jnp.einsum("wq,nhqf->nhwf", Uw, up)             # (N, H, W, F)
        residual = residual + up
    residual = residual.astype(jnp.bfloat16)             # halve residual HBM traffic
    # TODO(synk): reconstruct the residual tile in-kernel from the tiny (N,s,s,F)
    # stage tensors + Uh/Uw rows to remove this (N,H,W,F) HBM round-trip entirely.

    # Fused bottleneck: ReLU(x @ w_x + residual + bias)  -- no 5C concat in HBM.
    x_flat = x.reshape(N * H * W, C)
    r_flat = residual.reshape(N * H * W, F)
    out = fused_bottleneck_conv_relu(x_flat, params["w_x"], params["bias"], r_flat)
    out = out.reshape(N, H, W, F)
    return jnp.transpose(out, (0, 3, 1, 2))              # NHWC -> NCHW


# ----------------------- pure-JAX reference (original form) -----------------------

def psp_reference(raw, x_nchw):
    """Unfused fp32 reference following the original pool->conv->upsample->concat path."""
    N, C, H, W = x_nchw.shape
    x = jnp.transpose(x_nchw, (0, 2, 3, 1))
    priors = []
    for s, Wi in zip(raw["sizes"], raw["stage_w"]):
        Ah = _adaptive_pool_matrix(H, s)
        Aw = _adaptive_pool_matrix(W, s)
        pooled = jnp.einsum("ph,nhwc->npwc", Ah, x)
        pooled = jnp.einsum("qw,npwc->npqc", Aw, pooled)
        conv = jnp.einsum("npqc,dc->npqd", pooled, Wi)       # 1x1 conv, no bias
        Uh = _bilinear_upsample_matrix(s, H)
        Uw = _bilinear_upsample_matrix(s, W)
        up = jnp.einsum("hp,npqd->nhqd", Uh, conv)
        up = jnp.einsum("wq,nhqd->nhwd", Uw, up)
        priors.append(up)
    priors.append(x)
    cat = jnp.concatenate(priors, axis=-1)                   # (N, H, W, 5C)
    out = jnp.einsum("nhwk,fk->nhwf", cat, raw["bw"]) + raw["bb"]
    out = jnp.maximum(out, 0.0)
    return jnp.transpose(out, (0, 3, 1, 2))


if __name__ == "__main__":
    key = jax.random.PRNGKey(0)
    kx, kp = jax.random.split(key)
    N, C, H, W = 2, 4, 16, 16
    out_features = 32
    x = jax.random.normal(kx, (N, C, H, W), dtype=jnp.float32)
    raw = init_psp_params(kp, features=C, out_features=out_features, sizes=(1, 2, 3, 6))
    params = prepare_psp_params(raw)

    y = psp_forward(params, x)
    jax.block_until_ready(y)

    assert y.shape == (N, out_features, H, W)
    assert bool(jnp.all(y >= 0.0))                       # ReLU

    # Validate fused bf16/fp32 kernel path against the unfused fp32 reference.
    y_ref = psp_reference(raw, x)
    err = float(jnp.max(jnp.abs(y - y_ref)))
    assert err < 5e-2, f"max abs err {err}"

    print("KERNEL_OK")
</pallas_src>

<mosaic_0001>
module attributes {stable_mosaic.version = 11 : i64} {
  func.func @_bottleneck_kernel(%arg0: i32, %arg1: i32, %arg2: memref<256x4xbf16, #tpu.memory_space<vmem>>, %arg3: memref<4x32xbf16, #tpu.memory_space<vmem>>, %arg4: memref<1x32xf32, #tpu.memory_space<vmem>>, %arg5: memref<256x32xbf16, #tpu.memory_space<vmem>>, %arg6: memref<256x32xf32, #tpu.memory_space<vmem>>) attributes {dimension_semantics = [#tpu.dimension_semantics<parallel>, #tpu.dimension_semantics<arbitrary>], iteration_bounds = array<i64: 2, 1>, scalar_prefetch = 0 : i64, scratch_operands = 0 : i64, tpu.core_type = #tpu.core_type<tc>, window_params = [{transform_indices = @transform_0, window_bounds = array<i64: 256, 4>}, {pipeline_mode = #tpu.pipeline_mode<synchronous>, transform_indices = @transform_1, window_bounds = array<i64: 4, 32>}, {pipeline_mode = #tpu.pipeline_mode<synchronous>, transform_indices = @transform_2, window_bounds = array<i64: 1, 32>}, {transform_indices = @transform_3, window_bounds = array<i64: 256, 32>}, {transform_indices = @transform_4, window_bounds = array<i64: 256, 32>}]} {
    %c0_i32 = arith.constant 0 : i32
    %0 = arith.cmpi eq, %arg1, %c0_i32 : i32
    %1 = arith.extui %0 : i1 to i32
    %c0_i32_0 = arith.constant 0 : i32
    %2 = arith.cmpi ne, %1, %c0_i32_0 : i32
    scf.if %2 {
      %c0_10 = arith.constant 0 : index
      %c0_11 = arith.constant 0 : index
      %12 = vector.load %arg5[%c0_10, %c0_11] : memref<256x32xbf16, #tpu.memory_space<vmem>>, vector<256x32xbf16>
      %13 = arith.extf %12 : vector<256x32xbf16> to vector<256x32xf32>
      %c0_12 = arith.constant 0 : index
      %c0_13 = arith.constant 0 : index
      %14 = vector.load %arg4[%c0_12, %c0_13] : memref<1x32xf32, #tpu.memory_space<vmem>>, vector<1x32xf32>
      %15 = vector.broadcast %14 : vector<1x32xf32> to vector<256x32xf32>
      %16 = arith.addf %13, %15 : vector<256x32xf32>
      %c0_14 = arith.constant 0 : index
      %c0_15 = arith.constant 0 : index
      %17 = vector.load %arg6[%c0_14, %c0_15] : memref<256x32xf32, #tpu.memory_space<vmem>>, vector<256x32xf32>
      tpu.vector_store %arg6[%c0_14, %c0_15], %16 {strides = array<i32>} : memref<256x32xf32, #tpu.memory_space<vmem>>, vector<256x32xf32>,
    } else {
    }
    %c0 = arith.constant 0 : index
    %c0_1 = arith.constant 0 : index
    %3 = vector.load %arg6[%c0, %c0_1] : memref<256x32xf32, #tpu.memory_space<vmem>>, vector<256x32xf32>
    %c0_2 = arith.constant 0 : index
    %c0_3 = arith.constant 0 : index
    %4 = vector.load %arg2[%c0_2, %c0_3] : memref<256x4xbf16, #tpu.memory_space<vmem>>, vector<256x4xbf16>
    %c0_4 = arith.constant 0 : index
    %c0_5 = arith.constant 0 : index
    %5 = vector.load %arg3[%c0_4, %c0_5] : memref<4x32xbf16, #tpu.memory_space<vmem>>, vector<4x32xbf16>
    %cst = arith.constant dense<0.000000e+00> : vector<256x32xf32>
    %6 = tpu.matmul %4, %5, %cst {dimension_numbers = #tpu.dot_dimension_numbers<[1], [0], [0], [1], [0, 0, 1, 1], [], []>} : vector<256x4xbf16>, vector<4x32xbf16>, vector<256x32xf32> -> vector<256x32xf32>
    %7 = arith.addf %3, %6 : vector<256x32xf32>
    %c0_6 = arith.constant 0 : index
    %c0_7 = arith.constant 0 : index
    %8 = vector.load %arg6[%c0_6, %c0_7] : memref<256x32xf32, #tpu.memory_space<vmem>>, vector<256x32xf32>
    tpu.vector_store %arg6[%c0_6, %c0_7], %7 {strides = array<i32>} : memref<256x32xf32, #tpu.memory_space<vmem>>, vector<256x32xf32>,
    %c0_i32_8 = arith.constant 0 : i32
    %9 = arith.cmpi eq, %arg1, %c0_i32_8 : i32
    %10 = arith.extui %9 : i1 to i32
    %c0_i32_9 = arith.constant 0 : i32
    %11 = arith.cmpi ne, %10, %c0_i32_9 : i32
    scf.if %11 {
      %c0_10 = arith.constant 0 : index
      %c0_11 = arith.constant 0 : index
      %12 = vector.load %arg6[%c0_10, %c0_11] : memref<256x32xf32, #tpu.memory_space<vmem>>, vector<256x32xf32>
      %cst_12 = arith.constant 0.000000e+00 : f32
      %13 = vector.broadcast %cst_12 : f32 to vector<256x32xf32>
      %14 = arith.maximumf %12, %13 : vector<256x32xf32>
      %c0_13 = arith.constant 0 : index
      %c0_14 = arith.constant 0 : index
      %15 = vector.load %arg6[%c0_13, %c0_14] : memref<256x32xf32, #tpu.memory_space<vmem>>, vector<256x32xf32>
      tpu.vector_store %arg6[%c0_13, %c0_14], %14 {strides = array<i32>} : memref<256x32xf32, #tpu.memory_space<vmem>>, vector<256x32xf32>,
    } else {
    }
    return
  }
  func.func @transform_0(%arg0: i32, %arg1: i32) -> (i32, i32) {
    %c0_i32 = arith.constant 0 : i32
    return %arg0, %arg1 : i32, i32
  }
  func.func @transform_1(%arg0: i32, %arg1: i32) -> (i32, i32) {
    %c0_i32 = arith.constant 0 : i32
    %c0_i32_0 = arith.constant 0 : i32
    %c0_i32_1 = arith.constant 0 : i32
    return %c0_i32, %c0_i32_0 : i32, i32
  }
  func.func @transform_2(%arg0: i32, %arg1: i32) -> (i32, i32) {
    %c0_i32 = arith.constant 0 : i32
    %c0_i32_0 = arith.constant 0 : i32
    %c0_i32_1 = arith.constant 0 : i32
    return %c0_i32, %c0_i32_0 : i32, i32
  }
  func.func @transform_3(%arg0: i32, %arg1: i32) -> (i32, i32) {
    %c0_i32 = arith.constant 0 : i32
    %c0_i32_0 = arith.constant 0 : i32
    return %arg0, %c0_i32 : i32, i32
  }
  func.func @transform_4(%arg0: i32, %arg1: i32) -> (i32, i32) {
    %c0_i32 = arith.constant 0 : i32
    %c0_i32_0 = arith.constant 0 : i32
    return %arg0, %c0_i32 : i32, i32
  }
}

</mosaic_0001>

<bundles_post_ra>
// kernel: tpu_custom_call.1
= control target key start
LH: loop header
LB: loop body
LE: loop exit
PB: predicated region body
PF: predicated region fallthrough
CT: control target
= control target key end

     0   :  { %s1259_s15 = smov 0   ;;  %s1261_s16 = smov 0   ;;  %s1649_s0 = inlined_call_operand.vmem [shape: bf16[512,4], index: 0, kind: input, shape index: {}]   ;;  %s1650_s1 = inlined_call_operand.vmem [shape: bf16[4,32], index: 1, kind: input, shape index: {}]   ;;  %s1651_s2 = inlined_call_operand.vmem [shape: f32[1,32], index: 2, kind: input, shape index: {}]   ;;  %s1652_s3 = inlined_call_operand.vmem [shape: bf16[512,32], index: 3, kind: input, shape index: {}]   ;;  %s1653_s4 = inlined_call_operand.vmem [shape: f32[512,32], index: 4, kind: output, shape index: {}]  }
   0x1   :  { %s1263_s17 = smov 0  }
   0x2 LB: > { %s26_s18 = sadd.s32 1, %s1228_s16  ;;  %p994_p0 = scmp.ge.s32.totalorder %s1232_s17, 1  ;;  %s1232_s17 = sphi %s1263_s17, %s14_s17   ;;  %s1228_s16 = sphi %s1261_s16, %s1655_s16   ;;  %s1224_s15 = sphi %s1259_s15, %s1654_s15  }
   0x3   : > { %p28_p1 = scmp.ge.s32.totalorder %s26_s18, 2  ;;  %p191_p2 = scmp.lt.s32.totalorder %s1232_s17, 3 }
   0x5   : > { %s1657_s18 = smov (%p28_p1, %s26_s18), 0  ;;  %p192_p3 = pnand %p994_p0, %p191_p2 }
   0x6   : > { %s995_s21 = sshll.u32 (!%p192_p3), %s1224_s15, 5 }
   0x7   : > { %195 = sbr.rel (%p192_p3) target bundleno = 254 (0xfe), region = 36  ;;  %p226_p4 = scmp.lt.s32.totalorder (!%p192_p3), %s995_s21, 63 }
   0xc   : > { %v451_v0 = vld [vmem:[%s1650_s1] sm:$0x3]  ;;  %vm581_vm0 = vcmask 1041408   ;;  %s1659_s21 = smov (!%p226_p4, %s995_s21), 63  ;;  %vm532_vm1 = vcmask 31744   ;;  %vm354_vm2 = vcmask 261120  }
   0xd   : > { %1168 = vmatprep.subr.msk.bf16.mxu0 %vm581_vm0, %v451_v0  ;;  %1169 = vmatprep.subr.msk.bf16.mxu1 %vm581_vm0, %v451_v0  ;;  %v583_v1 = vsel %vm581_vm0, %v451_v0, 0  ;;  %s996_s22 = sshll.u32 %s1659_s21, 2  ;;  %s1000_s29 = sshll.u32 %s1659_s21, 3  ;;  %v1319_v14 = vld [vmem:[%s1651_s2] ss:$0 sm:$0xff] }
   0xe   : > { %1133 = vmatpush3.bf16.msra.mxu0 %v583_v1  ;;  %1167 = vmatpush3.bf16.msra.mxu1 %v583_v1  ;;  %s1286_s25 = scalar_lea.vmem %s1649_s0, %s996_s22  ;;  %s1310_s28 = scalar_lea.vmem %s1652_s3, %s996_s22 }
   0xf   : > { %v1194_v2 = vld [vmem:[%s1286_s25] sm:$0xff]   ;;  %v1196_v4 = vld [vmem:[%s1286_s25 + $0x8] sm:$0xff]   ;;  %v1198_v6 = vld [vmem:[%s1286_s25 + $0x10] sm:$0xff]   ;;  %s1326_s8 = scalar_lea.vmem %s1653_s4, %s1000_s29 }
  0x10   : > { %v1195_v3 = vld [vmem:[%s1286_s25 + $0x40] sm:$0xff]   ;;  %1134 = vmatprep.mubr.msk.bf16.mxu0 %vm532_vm1, %v1194_v2  ;;  %v1197_v5 = vld [vmem:[%s1286_s25 + $0x48] sm:$0xff]   ;;  %v1199_v7 = vld [vmem:[%s1286_s25 + $0x50] sm:$0xff]  }
  0x11   : > { %1150 = vmatprep.mubr.msk.bf16.mxu1 %vm532_vm1, %v1195_v3  ;;  %1135 = vmatmul.mubr.msk.bf16.vlgmr.msra.gmra.mxu0 %vm532_vm1, %v1196_v4  ;;  %v1200_v8 = vld [vmem:[%s1286_s25 + $0x18] sm:$0xff]   ;;  %v1202_v10 = vld [vmem:[%s1286_s25 + $0x20] sm:$0xff]   ;;  %v1204_v12 = vld [vmem:[%s1286_s25 + $0x28] sm:$0xff]  }
  0x12   : > { %1151 = vmatmul.mubr.msk.bf16.vlgmr.msra.gmra.mxu1 %vm532_vm1, %v1197_v5  ;;  %1138 = vmatprep.mubr.msk.bf16.mxu0 %vm532_vm1, %v1198_v6  ;;  %v1201_v9 = vld [vmem:[%s1286_s25 + $0x58] sm:$0xff]   ;;  %v1203_v11 = vld [vmem:[%s1286_s25 + $0x60] sm:$0xff]   ;;  %v1100_v13 = vld [vmem:[%s1310_s28 + $0x8] sm:$0xff]  }
  0x13   : > { %1154 = vmatprep.mubr.msk.bf16.mxu1 %vm532_vm1, %v1199_v7  ;;  %v1205_v15 = vld [vmem:[%s1286_s25 + $0x68] sm:$0xff]   ;;  %v1206_v16 = vld [vmem:[%s1286_s25 + $0x30] sm:$0xff]   ;;  %v1042_v17 = vunpack.c.l.bf16 %v1100_v13  ;;  %v1208_v20 = vld [vmem:[%s1286_s25 + $0x38] sm:$0xff]   ;;  %v1043_v31 = vunpack.c.h.bf16 %v1100_v13 }
  0x14   : > { %v1207_v18 = vld [vmem:[%s1286_s25 + $0x70] sm:$0xff]   ;;  %v1209_v21 = vld [vmem:[%s1286_s25 + $0x78] sm:$0xff]   ;;  %v1108_v22 = vld [vmem:[%s1310_s28 + $0x48] sm:$0xff]  }
  0x15   : > { %v324_v19 = vadd.f32 %v1042_v17, %v1319_v14  ;;  %v1074_v23 = vunpack.c.l.bf16 %v1108_v22  ;;  %v1037_v24 = vld [vmem:[%s1310_s28] sm:$0xff]   ;;  %v1075_v32 = vunpack.c.h.bf16 %v1108_v22  ;;  %v325_v33 = vadd.f32 %v1043_v31, %v1319_v14  ;;  %v1102_v37 = vld [vmem:[%s1310_s28 + $0x18] sm:$0xff]   ;;  %v1101_v43 = vld [vmem:[%s1310_s28 + $0x10] sm:$0xff]  }
  0x16   : > { %v1107_v25 = vld [vmem:[%s1310_s28 + $0x40] sm:$0xff]   ;;  %v1038_v27 = vunpack.c.l.bf16 %v1037_v24  ;;  %v1039_v35 = vunpack.c.h.bf16 %v1037_v24  ;;  %v1110_v38 = vld [vmem:[%s1310_s28 + $0x58] sm:$0xff]   ;;  %v1050_v41 = vunpack.c.l.bf16 %v1102_v37  ;;  %v1109_v44 = vld [vmem:[%s1310_s28 + $0x50] sm:$0xff]   ;;  %v1046_v47 = vunpack.c.l.bf16 %v1101_v43 }
  0x17   : > { %357 = vst.msk [vmem:[%s1326_s8 + $0x10] sm:$0xff] %vm354_vm2, %v324_v19  ;;  %v340_v26 = vadd.f32 %v1074_v23, %v1319_v14  ;;  %v1070_v28 = vunpack.c.l.bf16 %v1107_v25  ;;  %v341_v34 = vadd.f32 %v1075_v32, %v1319_v14  ;;  %v1071_v36 = vunpack.c.h.bf16 %v1107_v25  ;;  %358 = vst.msk [vmem:[%s1326_s8 + $0x18] sm:$0xff] %vm354_vm2, %v325_v33  ;;  %v1104_v57 = vld [vmem:[%s1310_s28 + $0x28] sm:$0xff]   ;;  %v1103_v63 = vld [vmem:[%s1310_s28 + $0x20] sm:$0xff]  }
  0x18   : > { %v322_v29 = vadd.f32 %v1038_v27, %v1319_v14  ;;  %v323_v39 = vadd.f32 %v1039_v35, %v1319_v14  ;;  %v1082_v42 = vunpack.c.l.bf16 %v1110_v38  ;;  %v328_v45 = vadd.f32 %v1050_v41, %v1319_v14  ;;  %v1112_v61 = vld [vmem:[%s1310_s28 + $0x68] sm:$0xff]   ;;  %v1111_v2 = vld [vmem:[%s1310_s28 + $0x60] sm:$0xff]   ;;  %v1106_v13 = vld [vmem:[%s1310_s28 + $0x38] sm:$0xff]  }
  0x19   : > { %1139 = vmatmul.mubr.msk.bf16.gmra.mxu0 %vm532_vm1, %v1200_v8  ;;  %373 = vst.msk [vmem:[%s1326_s8 + $0x90] sm:$0xff] %vm354_vm2, %v340_v26  ;;  %v338_v30 = vadd.f32 %v1070_v28, %v1319_v14  ;;  %374 = vst.msk [vmem:[%s1326_s8 + $0x98] sm:$0xff] %vm354_vm2, %v341_v34  ;;  %v339_v40 = vadd.f32 %v1071_v36, %v1319_v14  ;;  %v1078_v48 = vunpack.c.l.bf16 %v1109_v44  ;;  %v1051_v51 = vunpack.c.h.bf16 %v1102_v37  ;;  %v1113_v23 = vld [vmem:[%s1310_s28 + $0x70] sm:$0xff]  }
  0x1a   : > { %1155 = vmatmul.mubr.msk.bf16.gmra.mxu1 %vm532_vm1, %v1201_v9  ;;  %1142 = vmatprep.mubr.msk.bf16.mxu0 %vm532_vm1, %v1202_v10  ;;  %355 = vst.msk [vmem:[%s1326_s8] sm:$0xff] %vm354_vm2, %v322_v29  ;;  %356 = vst.msk [vmem:[%s1326_s8 + $0x8] sm:$0xff] %vm354_vm2, %v323_v39  ;;  %v344_v46 = vadd.f32 %v1082_v42, %v1319_v14  ;;  %v326_v49 = vadd.f32 %v1046_v47, %v1319_v14  ;;  %v1083_v52 = vunpack.c.h.bf16 %v1110_v38 }
  0x1b   : > { %1158 = vmatprep.mubr.msk.bf16.mxu1 %vm532_vm1, %v1203_v11  ;;  %371 = vst.msk [vmem:[%s1326_s8 + $0x80] sm:$0xff] %vm354_vm2, %v338_v30  ;;  %372 = vst.msk [vmem:[%s1326_s8 + $0x88] sm:$0xff] %vm354_vm2, %v339_v40  ;;  %v342_v50 = vadd.f32 %v1078_v48, %v1319_v14  ;;  %v329_v53 = vadd.f32 %v1051_v51, %v1319_v14  ;;  %v1047_v55 = vunpack.c.h.bf16 %v1101_v43  ;;  %v1079_v56 = vunpack.c.h.bf16 %v1109_v44 }
  0x1c   : > { %361 = vst.msk [vmem:[%s1326_s8 + $0x30] sm:$0xff] %vm354_vm2, %v328_v45  ;;  %377 = vst.msk [vmem:[%s1326_s8 + $0xb0] sm:$0xff] %vm354_vm2, %v344_v46  ;;  %v345_v54 = vadd.f32 %v1083_v52, %v1319_v14  ;;  %v1058_v60 = vunpack.c.l.bf16 %v1104_v57  ;;  %v1090_v62 = vunpack.c.l.bf16 %v1112_v61  ;;  %v1054_v1 = vunpack.c.l.bf16 %v1103_v63 }
  0x1d   : > { %359 = vst.msk [vmem:[%s1326_s8 + $0x20] sm:$0xff] %vm354_vm2, %v326_v49  ;;  %375 = vst.msk [vmem:[%s1326_s8 + $0xa0] sm:$0xff] %vm354_vm2, %v342_v50  ;;  %v327_v58 = vadd.f32 %v1047_v55, %v1319_v14  ;;  %v343_v59 = vadd.f32 %v1079_v56, %v1319_v14  ;;  %v1086_v4 = vunpack.c.l.bf16 %v1111_v2  ;;  %v1059_v6 = vunpack.c.h.bf16 %v1104_v57 }
  0x1e   : > { %362 = vst.msk [vmem:[%s1326_s8 + $0x38] sm:$0xff] %vm354_vm2, %v329_v53  ;;  %378 = vst.msk [vmem:[%s1326_s8 + $0xb8] sm:$0xff] %vm354_vm2, %v345_v54  ;;  %v332_v0 = vadd.f32 %v1058_v60, %v1319_v14  ;;  %v348_v3 = vadd.f32 %v1090_v62, %v1319_v14  ;;  %v330_v5 = vadd.f32 %v1054_v1, %v1319_v14  ;;  %v1091_v7 = vunpack.c.h.bf16 %v1112_v61  ;;  %v389_v36 = vld [vmem:[%s1326_s8 + $0x10] sm:$0xff] }
  0x1f   : > { %360 = vst.msk [vmem:[%s1326_s8 + $0x28] sm:$0xff] %vm354_vm2, %v327_v58  ;;  %376 = vst.msk [vmem:[%s1326_s8 + $0xa8] sm:$0xff] %vm354_vm2, %v343_v59  ;;  %v346_v8 = vadd.f32 %v1086_v4, %v1319_v14  ;;  %v333_v9 = vadd.f32 %v1059_v6, %v1319_v14  ;;  %v1055_v11 = vunpack.c.h.bf16 %v1103_v63  ;;  %v1066_v17 = vunpack.c.l.bf16 %v1106_v13 }
  0x20   : > { %365 = vst.msk [vmem:[%s1326_s8 + $0x50] sm:$0xff] %vm354_vm2, %v332_v0  ;;  %381 = vst.msk [vmem:[%s1326_s8 + $0xd0] sm:$0xff] %vm354_vm2, %v348_v3  ;;  %v349_v10 = vadd.f32 %v1091_v7, %v1319_v14  ;;  %v1094_v25 = vunpack.c.l.bf16 %v1113_v23  ;;  %v1067_v27 = vunpack.c.h.bf16 %v1106_v13  ;;  %v1095_v33 = vunpack.c.h.bf16 %v1113_v23  ;;  %v405_v37 = vld [vmem:[%s1326_s8 + $0x90] sm:$0xff]  ;;  %v406_v47 = vld [vmem:[%s1326_s8 + $0x98] sm:$0xff] }
  0x21   : > { %1143 = vmatmul.mubr.msk.bf16.gmra.mxu0 %vm532_vm1, %v1204_v12  ;;  %363 = vst.msk [vmem:[%s1326_s8 + $0x40] sm:$0xff] %vm354_vm2, %v330_v5  ;;  %v1087_v12 = vunpack.c.h.bf16 %v1111_v2  ;;  %379 = vst.msk [vmem:[%s1326_s8 + $0xc0] sm:$0xff] %vm354_vm2, %v346_v8  ;;  %v387_v39 = vld [vmem:[%s1326_s8] sm:$0xff]  ;;  %v388_v50 = vld [vmem:[%s1326_s8 + $0x8] sm:$0xff] }
  0x22   : > { %1159 = vmatmul.mubr.msk.bf16.gmra.mxu1 %vm532_vm1, %v1205_v15  ;;  %1146 = vmatprep.mubr.msk.bf16.mxu0 %vm532_vm1, %v1206_v16  ;;  %366 = vst.msk [vmem:[%s1326_s8 + $0x58] sm:$0xff] %vm354_vm2, %v333_v9  ;;  %382 = vst.msk [vmem:[%s1326_s8 + $0xd8] sm:$0xff] %vm354_vm2, %v349_v10  ;;  %v331_v15 = vadd.f32 %v1055_v11, %v1319_v14  ;;  %v350_v29 = vadd.f32 %v1094_v25, %v1319_v14  ;;  %v403_v42 = vld [vmem:[%s1326_s8 + $0x80] sm:$0xff]  ;;  %v404_v53 = vld [vmem:[%s1326_s8 + $0x88] sm:$0xff] }
  0x23   : > { %1162 = vmatprep.mubr.msk.bf16.mxu1 %vm532_vm1, %v1207_v18  ;;  %v347_v16 = vadd.f32 %v1087_v12, %v1319_v14  ;;  %v1114_v18 = vld [vmem:[%s1310_s28 + $0x78] sm:$0xff]   ;;  %v337_v30 = vadd.f32 %v1067_v27, %v1319_v14  ;;  %v351_v35 = vadd.f32 %v1095_v33, %v1319_v14  ;;  %v393_v56 = vld [vmem:[%s1326_s8 + $0x30] sm:$0xff] }
  0x24   : > { %v1098_v19 = vunpack.c.l.bf16 %v1114_v18  ;;  %364 = vst.msk [vmem:[%s1326_s8 + $0x48] sm:$0xff] %vm354_vm2, %v331_v15  ;;  %v1099_v28 = vunpack.c.h.bf16 %v1114_v18  ;;  %383 = vst.msk [vmem:[%s1326_s8 + $0xe0] sm:$0xff] %vm354_vm2, %v350_v29  ;;  %v409_v59 = vld [vmem:[%s1326_s8 + $0xb0] sm:$0xff]  ;;  %v391_v62 = vld [vmem:[%s1326_s8 + $0x20] sm:$0xff] }
  0x25   : > { %380 = vst.msk [vmem:[%s1326_s8 + $0xc8] sm:$0xff] %vm354_vm2, %v347_v16  ;;  %370 = vst.msk [vmem:[%s1326_s8 + $0x78] sm:$0xff] %vm354_vm2, %v337_v30  ;;  %v407_v1 = vld [vmem:[%s1326_s8 + $0xa0] sm:$0xff]  ;;  %v394_v5 = vld [vmem:[%s1326_s8 + $0x38] sm:$0xff] }
  0x26   : > { %v352_v24 = vadd.f32 %v1098_v19, %v1319_v14  ;;  %v353_v31 = vadd.f32 %v1099_v28, %v1319_v14  ;;  %384 = vst.msk [vmem:[%s1326_s8 + $0xe8] sm:$0xff] %vm354_vm2, %v351_v35  ;;  %v410_v10 = vld [vmem:[%s1326_s8 + $0xb8] sm:$0xff]  ;;  %v392_v16 = vld [vmem:[%s1326_s8 + $0x28] sm:$0xff] }
  0x28   : > { %385 = vst.msk [vmem:[%s1326_s8 + $0xf0] sm:$0xff] %vm354_vm2, %v352_v24  ;;  %386 = vst.msk [vmem:[%s1326_s8 + $0xf8] sm:$0xff] %vm354_vm2, %v353_v31  ;;  %v413_v31 = vld [vmem:[%s1326_s8 + $0xd0] sm:$0xff] }
  0x29   : > { %1147 = vmatmul.mubr.msk.bf16.gmra.mxu0 %vm532_vm1, %v1208_v20  ;;  %v1105_v20 = vld [vmem:[%s1310_s28 + $0x30] sm:$0xff]  }
  0x2a   : > { %1163 = vmatmul.mubr.msk.bf16.gmra.mxu1 %vm532_vm1, %v1209_v21  ;;  %v336_v21 = vadd.f32 %v1066_v17, %v1319_v14  ;;  %v1062_v22 = vunpack.c.l.bf16 %v1105_v20  ;;  %v1063_v32 = vunpack.c.h.bf16 %v1105_v20 }
  0x2c   : > { %369 = vst.msk [vmem:[%s1326_s8 + $0x70] sm:$0xff] %vm354_vm2, %v336_v21  ;;  %v334_v26 = vadd.f32 %v1062_v22, %v1319_v14  ;;  %v335_v34 = vadd.f32 %v1063_v32, %v1319_v14  ;;  %v390_v14 = vld [vmem:[%s1326_s8 + $0x18] sm:$0xff]  ;;  %v408_v21 = vld [vmem:[%s1326_s8 + $0xa8] sm:$0xff] }
  0x2e   : > { %367 = vst.msk [vmem:[%s1326_s8 + $0x60] sm:$0xff] %vm354_vm2, %v334_v26  ;;  %368 = vst.msk [vmem:[%s1326_s8 + $0x68] sm:$0xff] %vm354_vm2, %v335_v34  ;;  %v397_v26 = vld [vmem:[%s1326_s8 + $0x50] sm:$0xff] }
  0xd1   : > { %v1136_v38 = vpop.f32.mrf.mxu0 }
  0xd2   : > { %v748_v40 = vadd.f32 %v1136_v38, %v389_v36  ;;  %v1152_v41 = vpop.f32.mrf.mxu1  ;;  %v395_v36 = vld [vmem:[%s1326_s8 + $0x40] sm:$0xff] }
  0xd3   : > { %v764_v43 = vadd.f32 %v1152_v41, %v405_v37  ;;  %v619_v44 = vpop.f32.mrf.mxu0  ;;  %v411_v41 = vld [vmem:[%s1326_s8 + $0xc0] sm:$0xff] }
  0xd4   : > { %781 = vst.msk [vmem:[%s1326_s8 + $0x10] sm:$0xff] %vm354_vm2, %v748_v40  ;;  %v746_v45 = vadd.f32 %v619_v44, %v387_v39  ;;  %v683_v46 = vpop.f32.mrf.mxu1 }
  0xd5   : > { %797 = vst.msk [vmem:[%s1326_s8 + $0x90] sm:$0xff] %vm354_vm2, %v764_v43  ;;  %v762_v48 = vadd.f32 %v683_v46, %v403_v42  ;;  %v1137_v49 = vpop.f32.mrf.mxu0 }
  0xd6   : > { %779 = vst.msk [vmem:[%s1326_s8] sm:$0xff] %vm354_vm2, %v746_v45  ;;  %v749_v51 = vadd.f32 %v1137_v49, %v390_v14  ;;  %v1153_v52 = vpop.f32.mrf.mxu1  ;;  %v398_v45 = vld [vmem:[%s1326_s8 + $0x58] sm:$0xff] }
  0xd7   : > { %795 = vst.msk [vmem:[%s1326_s8 + $0x80] sm:$0xff] %vm354_vm2, %v762_v48  ;;  %v765_v54 = vadd.f32 %v1153_v52, %v406_v47  ;;  %v622_v55 = vpop.f32.mrf.mxu0 }
  0xd8   : > { %782 = vst.msk [vmem:[%s1326_s8 + $0x18] sm:$0xff] %vm354_vm2, %v749_v51  ;;  %v747_v57 = vadd.f32 %v622_v55, %v388_v50  ;;  %v686_v58 = vpop.f32.mrf.mxu1  ;;  %v414_v50 = vld [vmem:[%s1326_s8 + $0xd8] sm:$0xff]  ;;  %v396_v55 = vld [vmem:[%s1326_s8 + $0x48] sm:$0xff] }
  0xd9   : > { %798 = vst.msk [vmem:[%s1326_s8 + $0x98] sm:$0xff] %vm354_vm2, %v765_v54  ;;  %v763_v60 = vadd.f32 %v686_v58, %v404_v53  ;;  %v1140_v61 = vpop.f32.mrf.mxu0 }
  0xda   : > { %780 = vst.msk [vmem:[%s1326_s8 + $0x8] sm:$0xff] %vm354_vm2, %v747_v57  ;;  %v752_v63 = vadd.f32 %v1140_v61, %v393_v56  ;;  %v1156_v0 = vpop.f32.mrf.mxu1 }
  0xdb   : > { %v816_v2 = vld [vmem:[%s1326_s8 + $0x10] sm:$0xff]  ;;  %796 = vst.msk [vmem:[%s1326_s8 + $0x88] sm:$0xff] %vm354_vm2, %v763_v60  ;;  %v768_v3 = vadd.f32 %v1156_v0, %v409_v59  ;;  %v635_v4 = vpop.f32.mrf.mxu0  ;;  %v412_v60 = vld [vmem:[%s1326_s8 + $0xc8] sm:$0xff] }
  0xdc   : > { %v848_v6 = vmax.f32 %v816_v2, 0.0  ;;  %v832_v7 = vld [vmem:[%s1326_s8 + $0x90] sm:$0xff]  ;;  %785 = vst.msk [vmem:[%s1326_s8 + $0x30] sm:$0xff] %vm354_vm2, %v752_v63  ;;  %v750_v8 = vadd.f32 %v635_v4, %v391_v62  ;;  %v699_v9 = vpop.f32.mrf.mxu1 }
  0xdd   : > { %v864_v11 = vmax.f32 %v832_v7, 0.0  ;;  %v814_v12 = vld [vmem:[%s1326_s8] sm:$0xff]  ;;  %801 = vst.msk [vmem:[%s1326_s8 + $0xb0] sm:$0xff] %vm354_vm2, %v768_v3  ;;  %v766_v13 = vadd.f32 %v699_v9, %v407_v1  ;;  %v1141_v15 = vpop.f32.mrf.mxu0  ;;  %v401_v1 = vld [vmem:[%s1326_s8 + $0x70] sm:$0xff] }
  0xde   : > { %880 = vst.msk [vmem:[%s1326_s8 + $0x10] sm:$0xff] %vm354_vm2, %v848_v6  ;;  %v846_v17 = vmax.f32 %v814_v12, 0.0  ;;  %v830_v18 = vld [vmem:[%s1326_s8 + $0x80] sm:$0xff]  ;;  %783 = vst.msk [vmem:[%s1326_s8 + $0x20] sm:$0xff] %vm354_vm2, %v750_v8  ;;  %v753_v19 = vadd.f32 %v1141_v15, %v394_v5  ;;  %v1157_v20 = vpop.f32.mrf.mxu1  ;;  %v417_v6 = vld [vmem:[%s1326_s8 + $0xf0] sm:$0xff] }
  0xdf   : > { %896 = vst.msk [vmem:[%s1326_s8 + $0x90] sm:$0xff] %vm354_vm2, %v864_v11  ;;  %v862_v22 = vmax.f32 %v830_v18, 0.0  ;;  %v817_v23 = vld [vmem:[%s1326_s8 + $0x18] sm:$0xff]  ;;  %799 = vst.msk [vmem:[%s1326_s8 + $0xa0] sm:$0xff] %vm354_vm2, %v766_v13  ;;  %v769_v24 = vadd.f32 %v1157_v20, %v410_v10  ;;  %v638_v25 = vpop.f32.mrf.mxu0  ;;  %v399_v11 = vld [vmem:[%s1326_s8 + $0x60] sm:$0xff] }
  0xe0   : > { %878 = vst.msk [vmem:[%s1326_s8] sm:$0xff] %vm354_vm2, %v846_v17  ;;  %v849_v27 = vmax.f32 %v817_v23, 0.0  ;;  %v833_v28 = vld [vmem:[%s1326_s8 + $0x98] sm:$0xff]  ;;  %786 = vst.msk [vmem:[%s1326_s8 + $0x38] sm:$0xff] %vm354_vm2, %v753_v19  ;;  %v751_v29 = vadd.f32 %v638_v25, %v392_v16  ;;  %v702_v30 = vpop.f32.mrf.mxu1  ;;  %v415_v17 = vld [vmem:[%s1326_s8 + $0xe0] sm:$0xff] }
  0xe1   : > { %894 = vst.msk [vmem:[%s1326_s8 + $0x80] sm:$0xff] %vm354_vm2, %v862_v22  ;;  %v865_v32 = vmax.f32 %v833_v28, 0.0  ;;  %v815_v33 = vld [vmem:[%s1326_s8 + $0x8] sm:$0xff]  ;;  %802 = vst.msk [vmem:[%s1326_s8 + $0xb8] sm:$0xff] %vm354_vm2, %v769_v24  ;;  %v767_v34 = vadd.f32 %v702_v30, %v408_v21  ;;  %v1144_v35 = vpop.f32.mrf.mxu0  ;;  %v402_v22 = vld [vmem:[%s1326_s8 + $0x78] sm:$0xff] }
  0xe2   : > { %881 = vst.msk [vmem:[%s1326_s8 + $0x18] sm:$0xff] %vm354_vm2, %v849_v27  ;;  %v847_v37 = vmax.f32 %v815_v33, 0.0  ;;  %v831_v38 = vld [vmem:[%s1326_s8 + $0x88] sm:$0xff]  ;;  %784 = vst.msk [vmem:[%s1326_s8 + $0x28] sm:$0xff] %vm354_vm2, %v751_v29  ;;  %v756_v39 = vadd.f32 %v1144_v35, %v397_v26  ;;  %v1160_v40 = vpop.f32.mrf.mxu1  ;;  %v418_v27 = vld [vmem:[%s1326_s8 + $0xf8] sm:$0xff] }
  0xe3   : > { %897 = vst.msk [vmem:[%s1326_s8 + $0x98] sm:$0xff] %vm354_vm2, %v865_v32  ;;  %v863_v42 = vmax.f32 %v831_v38, 0.0  ;;  %v820_v43 = vld [vmem:[%s1326_s8 + $0x30] sm:$0xff]  ;;  %800 = vst.msk [vmem:[%s1326_s8 + $0xa8] sm:$0xff] %vm354_vm2, %v767_v34  ;;  %v772_v44 = vadd.f32 %v1160_v40, %v413_v31  ;;  %v651_v14 = vpop.f32.mrf.mxu0  ;;  %v400_v32 = vld [vmem:[%s1326_s8 + $0x68] sm:$0xff] }
  0xe4   : > { %879 = vst.msk [vmem:[%s1326_s8 + $0x8] sm:$0xff] %vm354_vm2, %v847_v37  ;;  %v852_v46 = vmax.f32 %v820_v43, 0.0  ;;  %v836_v47 = vld [vmem:[%s1326_s8 + $0xb0] sm:$0xff]  ;;  %789 = vst.msk [vmem:[%s1326_s8 + $0x50] sm:$0xff] %vm354_vm2, %v756_v39  ;;  %v754_v48 = vadd.f32 %v651_v14, %v395_v36  ;;  %v715_v49 = vpop.f32.mrf.mxu1  ;;  %v416_v37 = vld [vmem:[%s1326_s8 + $0xe8] sm:$0xff] }
  0xe5   : > { %895 = vst.msk [vmem:[%s1326_s8 + $0x88] sm:$0xff] %vm354_vm2, %v863_v42  ;;  %v868_v51 = vmax.f32 %v836_v47, 0.0  ;;  %v818_v52 = vld [vmem:[%s1326_s8 + $0x20] sm:$0xff]  ;;  %805 = vst.msk [vmem:[%s1326_s8 + $0xd0] sm:$0xff] %vm354_vm2, %v772_v44  ;;  %v770_v53 = vadd.f32 %v715_v49, %v411_v41  ;;  %v1145_v54 = vpop.f32.mrf.mxu0 }
  0xe6   : > { %884 = vst.msk [vmem:[%s1326_s8 + $0x30] sm:$0xff] %vm354_vm2, %v852_v46  ;;  %v850_v56 = vmax.f32 %v818_v52, 0.0  ;;  %v834_v57 = vld [vmem:[%s1326_s8 + $0xa0] sm:$0xff]  ;;  %787 = vst.msk [vmem:[%s1326_s8 + $0x40] sm:$0xff] %vm354_vm2, %v754_v48  ;;  %v757_v58 = vadd.f32 %v1145_v54, %v398_v45  ;;  %v1161_v59 = vpop.f32.mrf.mxu1 }
  0xe7   : > { %900 = vst.msk [vmem:[%s1326_s8 + $0xb0] sm:$0xff] %vm354_vm2, %v868_v51  ;;  %v866_v61 = vmax.f32 %v834_v57, 0.0  ;;  %v821_v62 = vld [vmem:[%s1326_s8 + $0x38] sm:$0xff]  ;;  %803 = vst.msk [vmem:[%s1326_s8 + $0xc0] sm:$0xff] %vm354_vm2, %v770_v53  ;;  %v773_v63 = vadd.f32 %v1161_v59, %v414_v50  ;;  %v654_v0 = vpop.f32.mrf.mxu0 }
  0xe8   : > { %882 = vst.msk [vmem:[%s1326_s8 + $0x20] sm:$0xff] %vm354_vm2, %v850_v56  ;;  %v853_v2 = vmax.f32 %v821_v62, 0.0  ;;  %v837_v3 = vld [vmem:[%s1326_s8 + $0xb8] sm:$0xff]  ;;  %790 = vst.msk [vmem:[%s1326_s8 + $0x58] sm:$0xff] %vm354_vm2, %v757_v58  ;;  %v755_v4 = vadd.f32 %v654_v0, %v396_v55  ;;  %v718_v5 = vpop.f32.mrf.mxu1 }
  0xe9   : > { %898 = vst.msk [vmem:[%s1326_s8 + $0xa0] sm:$0xff] %vm354_vm2, %v866_v61  ;;  %v869_v7 = vmax.f32 %v837_v3, 0.0  ;;  %v819_v8 = vld [vmem:[%s1326_s8 + $0x28] sm:$0xff]  ;;  %806 = vst.msk [vmem:[%s1326_s8 + $0xd8] sm:$0xff] %vm354_vm2, %v773_v63  ;;  %v771_v9 = vadd.f32 %v718_v5, %v412_v60  ;;  %v1148_v10 = vpop.f32.mrf.mxu0 }
  0xea   : > { %885 = vst.msk [vmem:[%s1326_s8 + $0x38] sm:$0xff] %vm354_vm2, %v853_v2  ;;  %v851_v12 = vmax.f32 %v819_v8, 0.0  ;;  %v835_v13 = vld [vmem:[%s1326_s8 + $0xa8] sm:$0xff]  ;;  %788 = vst.msk [vmem:[%s1326_s8 + $0x48] sm:$0xff] %vm354_vm2, %v755_v4  ;;  %v760_v15 = vadd.f32 %v1148_v10, %v401_v1  ;;  %v1164_v16 = vpop.f32.mrf.mxu1 }
  0xeb   : > { %901 = vst.msk [vmem:[%s1326_s8 + $0xb8] sm:$0xff] %vm354_vm2, %v869_v7  ;;  %v867_v18 = vmax.f32 %v835_v13, 0.0  ;;  %v824_v19 = vld [vmem:[%s1326_s8 + $0x50] sm:$0xff]  ;;  %804 = vst.msk [vmem:[%s1326_s8 + $0xc8] sm:$0xff] %vm354_vm2, %v771_v9  ;;  %v776_v20 = vadd.f32 %v1164_v16, %v417_v6  ;;  %v667_v21 = vpop.f32.mrf.mxu0 }
  0xec   : > { %883 = vst.msk [vmem:[%s1326_s8 + $0x28] sm:$0xff] %vm354_vm2, %v851_v12  ;;  %v856_v23 = vmax.f32 %v824_v19, 0.0  ;;  %v840_v24 = vld [vmem:[%s1326_s8 + $0xd0] sm:$0xff]  ;;  %793 = vst.msk [vmem:[%s1326_s8 + $0x70] sm:$0xff] %vm354_vm2, %v760_v15  ;;  %v758_v25 = vadd.f32 %v667_v21, %v399_v11  ;;  %v731_v26 = vpop.f32.mrf.mxu1 }
  0xed   : > { %899 = vst.msk [vmem:[%s1326_s8 + $0xa8] sm:$0xff] %vm354_vm2, %v867_v18  ;;  %v872_v28 = vmax.f32 %v840_v24, 0.0  ;;  %v822_v29 = vld [vmem:[%s1326_s8 + $0x40] sm:$0xff]  ;;  %809 = vst.msk [vmem:[%s1326_s8 + $0xf0] sm:$0xff] %vm354_vm2, %v776_v20  ;;  %v774_v30 = vadd.f32 %v731_v26, %v415_v17  ;;  %v1149_v31 = vpop.f32.mrf.mxu0 }
  0xee   : > { %888 = vst.msk [vmem:[%s1326_s8 + $0x50] sm:$0xff] %vm354_vm2, %v856_v23  ;;  %v854_v33 = vmax.f32 %v822_v29, 0.0  ;;  %v838_v34 = vld [vmem:[%s1326_s8 + $0xc0] sm:$0xff]  ;;  %791 = vst.msk [vmem:[%s1326_s8 + $0x60] sm:$0xff] %vm354_vm2, %v758_v25  ;;  %v761_v35 = vadd.f32 %v1149_v31, %v402_v22  ;;  %v1165_v36 = vpop.f32.mrf.mxu1 }
  0xef   : > { %904 = vst.msk [vmem:[%s1326_s8 + $0xd0] sm:$0xff] %vm354_vm2, %v872_v28  ;;  %v870_v38 = vmax.f32 %v838_v34, 0.0  ;;  %v825_v39 = vld [vmem:[%s1326_s8 + $0x58] sm:$0xff]  ;;  %807 = vst.msk [vmem:[%s1326_s8 + $0xe0] sm:$0xff] %vm354_vm2, %v774_v30  ;;  %v777_v40 = vadd.f32 %v1165_v36, %v418_v27  ;;  %v670_v41 = vpop.f32.mrf.mxu0 }
  0xf0   : > { %886 = vst.msk [vmem:[%s1326_s8 + $0x40] sm:$0xff] %vm354_vm2, %v854_v33  ;;  %v857_v42 = vmax.f32 %v825_v39, 0.0  ;;  %v841_v43 = vld [vmem:[%s1326_s8 + $0xd8] sm:$0xff]  ;;  %794 = vst.msk [vmem:[%s1326_s8 + $0x78] sm:$0xff] %vm354_vm2, %v761_v35  ;;  %v759_v44 = vadd.f32 %v670_v41, %v400_v32  ;;  %v734_v14 = vpop.f32.mrf.mxu1 }
  0xf1   : > { %902 = vst.msk [vmem:[%s1326_s8 + $0xc0] sm:$0xff] %vm354_vm2, %v870_v38  ;;  %v873_v45 = vmax.f32 %v841_v43, 0.0  ;;  %v823_v46 = vld [vmem:[%s1326_s8 + $0x48] sm:$0xff]  ;;  %810 = vst.msk [vmem:[%s1326_s8 + $0xf8] sm:$0xff] %vm354_vm2, %v777_v40  ;;  %v775_v47 = vadd.f32 %v734_v14, %v416_v37 }
  0xf2   : > { %889 = vst.msk [vmem:[%s1326_s8 + $0x58] sm:$0xff] %vm354_vm2, %v857_v42  ;;  %v855_v48 = vmax.f32 %v823_v46, 0.0  ;;  %v839_v49 = vld [vmem:[%s1326_s8 + $0xc8] sm:$0xff]  ;;  %792 = vst.msk [vmem:[%s1326_s8 + $0x68] sm:$0xff] %vm354_vm2, %v759_v44 }
  0xf3   : > { %905 = vst.msk [vmem:[%s1326_s8 + $0xd8] sm:$0xff] %vm354_vm2, %v873_v45  ;;  %v871_v50 = vmax.f32 %v839_v49, 0.0  ;;  %v828_v51 = vld [vmem:[%s1326_s8 + $0x70] sm:$0xff]  ;;  %808 = vst.msk [vmem:[%s1326_s8 + $0xe8] sm:$0xff] %vm354_vm2, %v775_v47 }
  0xf4   : > { %887 = vst.msk [vmem:[%s1326_s8 + $0x48] sm:$0xff] %vm354_vm2, %v855_v48  ;;  %v860_v52 = vmax.f32 %v828_v51, 0.0  ;;  %v844_v53 = vld [vmem:[%s1326_s8 + $0xf0] sm:$0xff] }
  0xf5   : > { %903 = vst.msk [vmem:[%s1326_s8 + $0xc8] sm:$0xff] %vm354_vm2, %v871_v50  ;;  %v876_v54 = vmax.f32 %v844_v53, 0.0  ;;  %v826_v55 = vld [vmem:[%s1326_s8 + $0x60] sm:$0xff] }
  0xf6   : > { %892 = vst.msk [vmem:[%s1326_s8 + $0x70] sm:$0xff] %vm354_vm2, %v860_v52  ;;  %v858_v56 = vmax.f32 %v826_v55, 0.0  ;;  %v842_v57 = vld [vmem:[%s1326_s8 + $0xe0] sm:$0xff] }
  0xf7   : > { %908 = vst.msk [vmem:[%s1326_s8 + $0xf0] sm:$0xff] %vm354_vm2, %v876_v54  ;;  %v874_v58 = vmax.f32 %v842_v57, 0.0  ;;  %v829_v59 = vld [vmem:[%s1326_s8 + $0x78] sm:$0xff] }
  0xf8   : > { %890 = vst.msk [vmem:[%s1326_s8 + $0x60] sm:$0xff] %vm354_vm2, %v858_v56  ;;  %v861_v60 = vmax.f32 %v829_v59, 0.0  ;;  %v845_v61 = vld [vmem:[%s1326_s8 + $0xf8] sm:$0xff] }
  0xf9   : > { %906 = vst.msk [vmem:[%s1326_s8 + $0xe0] sm:$0xff] %vm354_vm2, %v874_v58  ;;  %v877_v62 = vmax.f32 %v845_v61, 0.0  ;;  %v827_v63 = vld [vmem:[%s1326_s8 + $0x68] sm:$0xff] }
  0xfa   : > { %893 = vst.msk [vmem:[%s1326_s8 + $0x78] sm:$0xff] %vm354_vm2, %v861_v60  ;;  %v859_v0 = vmax.f32 %v827_v63, 0.0  ;;  %v843_v1 = vld [vmem:[%s1326_s8 + $0xe8] sm:$0xff] }
  0xfb   : > { %909 = vst.msk [vmem:[%s1326_s8 + $0xf8] sm:$0xff] %vm354_vm2, %v877_v62  ;;  %v875_v2 = vmax.f32 %v843_v1, 0.0 }
  0xfc   : > { %891 = vst.msk [vmem:[%s1326_s8 + $0x68] sm:$0xff] %vm354_vm2, %v859_v0 }
  0xfd   : > { %907 = vst.msk [vmem:[%s1326_s8 + $0xe8] sm:$0xff] %vm354_vm2, %v875_v2 }
  0xfe PF: > { %s14_s17 = sadd.s32 1, %s1232_s17   ;;  %s1654_s15 = smov %s1228_s16 }
  0xff   : > { %p11_p5 = scmp.ge.s32.totalorder %s14_s17, 4   ;;  %s1655_s16 = smov %s1657_s18 }
 0x101   :  { %13 = sbr.rel (!%p11_p5) target bundleno = 2 (0x2), region = 77 }

</bundles_post_ra>
